<compile_context>
chip_gen: v7x
topology: tpu7x:2x2x1
jax: 0.10.0
libtpu: 0.0.40
codegen_flags: <defaults>
</compile_context>

<pallas_src>
import math

import jax
import jax.numpy as jnp
from jax.experimental import pallas as pl
from jax.experimental.pallas import tpu as pltpu


# ------------------------------ fused kernel --------------------------------


def _mgcl_kernel(adj_ref, x_ref, w_ref, b_ref, lw_ref, lb_ref, out_ref, acc_ref):
    # adj_ref : (1, Bt, N, N)              this head's adjacency, this batch tile
    # x_ref   : (Bt, N, mem_dim)
    # w_ref   : (1, layers, Dmax, head_dim)  zero-padded along Dmax
    # b_ref   : (1, layers, 1, head_dim)
    # lw_ref  : (1, mem_dim, mem_dim)        this head's slice of the final Linear
    # lb_ref  : (1, mem_dim)
    # out_ref : (Bt*N, mem_dim)
    # acc_ref : (Bt*N, mem_dim) f32          projection accumulator across heads
    h = pl.program_id(1)

    _, bt, n, _ = adj_ref.shape
    mem_dim = x_ref.shape[-1]
    layers = w_ref.shape[1]
    head_dim = w_ref.shape[-1]
    m = bt * n

    @pl.when(h == 0)
    def _():
        acc_ref[...] = jnp.zeros_like(acc_ref)

    adj = adj_ref[0].astype(jnp.float32)                      # (Bt, N, N)
    x3 = x_ref[...].astype(jnp.float32)                       # (Bt, N, mem)
    x2 = x3.reshape(m, mem_dim)

    # denom = adj.sum(-1) + 1  (> 0); relu(pre / denom) below.
    denom = (jnp.sum(adj, axis=-1, keepdims=True) + 1.0).reshape(m, 1)
    # TODO(synk): pl.reciprocal(denom, approx=True) would use the EUP slot; exact
    #             divide kept to preserve the 1e-4 match vs. the f32 reference.

    lw = lw_ref[0].astype(jnp.float32)                        # (mem, mem)

    # Per-head contribution to the final Linear (residual fused):
    #   (concat_l gAxW_l + x) @ lw_h == x @ lw_h + sum_l gAxW_l @ lw_h[l*hd:(l+1)*hd]
    head_out = jnp.dot(x2, lw, preferred_element_type=jnp.float32)

    # The growing concat cur_l = [x | gAxW_0 | ... | gAxW_{l-1}] is kept factored:
    # adj @ cur_l distributes over feature blocks, so
    #   (adj @ cur_l + cur_l) @ W_l == sum_p (adj @ p + p) @ W_l[rows of p]
    ax = jnp.einsum("bij,bjd->bid", adj, x3, preferred_element_type=jnp.float32)
    pieces = [((ax + x3).reshape(m, mem_dim), 0, mem_dim)]    # (value, W-row off, width)

    for l in range(layers):                                   # static unroll (small)
        w_l = w_ref[0, l].astype(jnp.float32)                 # (Dmax, hd)
        b_l = b_ref[0, l].astype(jnp.float32)                 # (1, hd)
        # Linear(Ax) + Linear(cur) == (Ax + cur) @ W + 2 b    (same Linear twice)
        pre = 2.0 * b_l
        for val, off, width in pieces:
            pre = pre + jnp.dot(val, w_l[off:off + width, :],
                                preferred_element_type=jnp.float32)
        g = jnp.maximum(pre / denom, 0.0)                     # (m, hd)
        head_out = head_out + jnp.dot(
            g, lw[l * head_dim:(l + 1) * head_dim, :],
            preferred_element_type=jnp.float32)
        if l + 1 < layers:                                    # last gAxW feeds no layer
            g3 = g.reshape(bt, n, head_dim)
            ag = jnp.einsum("bij,bjd->bid", adj, g3,
                            preferred_element_type=jnp.float32)
            pieces.append(((ag + g3).reshape(m, head_dim),
                           mem_dim + l * head_dim, head_dim))

    acc_ref[...] += head_out

    @pl.when(h == pl.num_programs(1) - 1)
    def _():
        out_ref[...] = (acc_ref[...] +
                        lb_ref[...].astype(jnp.float32)).astype(out_ref.dtype)


# ------------------------------ tiling helpers -------------------------------


def _pick_batch_tile(batch, n, target_rows=256):
    """Bt so that Bt*N ~ target MXU rows (256 suits v6e/v7x; fine on v5e),
    >= 2 batch tiles when the batch allows it, and Bt*N a multiple of 8
    (sublane tiling of the 2-D output block)."""
    step = 8 // math.gcd(n, 8)                   # bt multiple of step => bt*n % 8 == 0
    bt = max(step, (target_rows // max(n, 1)) // step * step)
    bt = min(bt, pl.cdiv(batch, step) * step)    # don't over-pad tiny batches
    half = (batch // 2) // step * step
    if half >= step:
        bt = min(bt, half)                       # prefer >= 2 batch tiles
    return bt


def _vmem_limit_bytes(bt, n, mem_dim, layers, dmax, head_dim):
    f32 = 4
    per_step = (bt * n * n + bt * n * mem_dim                 # adj, x blocks
                + layers * dmax * head_dim + layers * head_dim
                + mem_dim * mem_dim + mem_dim                 # weights
                + bt * n * mem_dim) * f32                     # out block
    est = 2 * per_step + bt * n * mem_dim * f32 + (8 << 20)   # dbl-buffer + acc + headroom
    return int(min(max(est, 32 << 20), 48 << 20))             # safe on v5e/v6e/v7x


# --------------------------------- wrapper -----------------------------------


def multi_graph_conv_layer(packed, adj_list, gcn_inputs, *, batch_tile=None):
    """Fused forward. adj_list: (heads, B, N, N); gcn_inputs: (B, N, mem_dim)."""
    heads, batch, n, _ = adj_list.shape
    mem_dim = gcn_inputs.shape[-1]
    _, layers, dmax, head_dim = packed["w_stack"].shape
    assert layers * head_dim == mem_dim, "mem_dim must be divisible by layers"

    if batch_tile is None:
        batch_tile = _pick_batch_tile(batch, n)
    nb = pl.cdiv(batch, batch_tile)
    b_pad = nb * batch_tile
    if b_pad != batch:                           # zero-pad ragged batches (denom stays > 0)
        adj_list = jnp.pad(adj_list, ((0, 0), (0, b_pad - batch), (0, 0), (0, 0)))
        gcn_inputs = jnp.pad(gcn_inputs, ((0, b_pad - batch), (0, 0), (0, 0)))

    out2d = pl.pallas_call(
        _mgcl_kernel,
        out_shape=jax.ShapeDtypeStruct((b_pad * n, mem_dim), gcn_inputs.dtype),
        grid=(nb, heads),                         # heads innermost: projection reduction
        in_specs=[
            pl.BlockSpec((1, batch_tile, n, n), lambda b, h: (h, b, 0, 0)),
            pl.BlockSpec((batch_tile, n, mem_dim), lambda b, h: (b, 0, 0)),
            pl.BlockSpec((1, layers, dmax, head_dim), lambda b, h: (h, 0, 0, 0)),
            pl.BlockSpec((1, layers, 1, head_dim), lambda b, h: (h, 0, 0, 0)),
            pl.BlockSpec((1, mem_dim, mem_dim), lambda b, h: (h, 0, 0)),
            pl.BlockSpec((1, mem_dim), lambda b, h: (0, 0)),
        ],
        out_specs=pl.BlockSpec((batch_tile * n, mem_dim), lambda b, h: (b, 0)),
        scratch_shapes=[pltpu.VMEM((batch_tile * n, mem_dim), jnp.float32)],
        compiler_params=pltpu.CompilerParams(
            dimension_semantics=("parallel", "arbitrary"),
            vmem_limit_bytes=_vmem_limit_bytes(batch_tile, n, mem_dim,
                                               layers, dmax, head_dim)),
    )(adj_list, gcn_inputs, packed["w_stack"], packed["b_stack"],
      packed["lw"], packed["lb"])

    return out2d[: batch * n].reshape(batch, n, mem_dim)


# ------------------------ parameters & packing glue --------------------------


def init_params(key, mem_dim, layers, heads, dtype=jnp.float32):
    """Deterministic init mimicking nn.Linear default (uniform +-1/sqrt(fan_in))."""
    assert mem_dim % layers == 0
    head_dim = mem_dim // layers
    params = {"weight_list": []}
    for _ in range(heads):
        for j in range(layers):
            fan_in = mem_dim + head_dim * j
            key, kw, kb = jax.random.split(key, 3)
            bound = 1.0 / math.sqrt(fan_in)
            w = jax.random.uniform(kw, (fan_in, head_dim), dtype, -bound, bound)
            b = jax.random.uniform(kb, (1, head_dim), dtype, -bound, bound)
            params["weight_list"].append((w, b))
    fan_in = mem_dim * heads
    key, kw, kb = jax.random.split(key, 3)
    bound = 1.0 / math.sqrt(fan_in)
    params["linear_w"] = jax.random.uniform(kw, (fan_in, mem_dim), dtype, -bound, bound)
    params["linear_b"] = jax.random.uniform(kb, (1, mem_dim), dtype, -bound, bound)
    return params


def pack_params(params, mem_dim, layers, heads):
    """Stack & zero-pad the per-(head,layer) weights once (outside the hot path)."""
    head_dim = mem_dim // layers
    dmax = mem_dim + head_dim * (layers - 1)
    w_stack = jnp.zeros((heads, layers, dmax, head_dim), jnp.float32)
    b_stack = jnp.zeros((heads, layers, 1, head_dim), jnp.float32)
    for i in range(heads):
        for l in range(layers):
            w, b = params["weight_list"][i * layers + l]
            w_stack = w_stack.at[i, l, : w.shape[0], :].set(w.astype(jnp.float32))
            b_stack = b_stack.at[i, l, 0, :].set(b.reshape(-1).astype(jnp.float32))
    return {
        "w_stack": w_stack,
        "b_stack": b_stack,
        "lw": params["linear_w"].reshape(heads, mem_dim, mem_dim).astype(jnp.float32),
        "lb": params["linear_b"].reshape(1, mem_dim).astype(jnp.float32),
    }


# ----------------------------- reference (JAX) ------------------------------


def reference_forward(params, adj_list, gcn_inputs, mem_dim, layers, heads):
    multi_head_list = []
    for i in range(heads):
        adj = adj_list[i]
        denom = jnp.sum(adj, axis=2, keepdims=True) + 1.0
        outputs = gcn_inputs
        cache_list = [outputs]
        output_list = []
        for l in range(layers):
            index = i * layers + l
            w, b = params["weight_list"][index]
            Ax = jnp.einsum("bnm,bmd->bnd", adj, outputs)
            AxW = Ax @ w + b + (outputs @ w + b)
            gAxW = jax.nn.relu(AxW / denom)
            cache_list.append(gAxW)
            outputs = jnp.concatenate(cache_list, axis=2)
            output_list.append(gAxW)
        gcn_outputs = jnp.concatenate(output_list, axis=2) + gcn_inputs
        multi_head_list.append(gcn_outputs)
    final_output = jnp.concatenate(multi_head_list, axis=2)
    return final_output @ params["linear_w"] + params["linear_b"]


# ---------------------------------- main ------------------------------------


if __name__ == "__main__":
    mem_dim, layers, heads = 32, 2, 2   # head_dim = 16
    B, N = 2, 8

    key = jax.random.PRNGKey(0)
    kp, ka, kx = jax.random.split(key, 3)

    params = init_params(kp, mem_dim, layers, heads)
    packed = pack_params(params, mem_dim, layers, heads)

    # soft (attention-style) adjacency: non-negative, rows sum to 1 -> denom > 0
    adj_list = jax.nn.softmax(jax.random.normal(ka, (heads, B, N, N)), axis=-1)
    gcn_inputs = jax.random.normal(kx, (B, N, mem_dim), dtype=jnp.float32)

    out = multi_graph_conv_layer(packed, adj_list, gcn_inputs)
    out = jax.block_until_ready(out)

    ref = reference_forward(params, adj_list, gcn_inputs, mem_dim, layers, heads)
    assert out.shape == (B, N, mem_dim), out.shape
    max_err = float(jnp.max(jnp.abs(out - ref)))
    assert jnp.allclose(out, ref, atol=1e-4, rtol=1e-4), max_err

    print("KERNEL_OK")
</pallas_src>

<mosaic_0001>
module attributes {stable_mosaic.version = 11 : i64} {
  func.func @_mgcl_kernel(%arg0: i32, %arg1: i32, %arg2: memref<1x1x8x8xf32, #tpu.memory_space<vmem>>, %arg3: memref<1x8x32xf32, #tpu.memory_space<vmem>>, %arg4: memref<1x2x48x16xf32, #tpu.memory_space<vmem>>, %arg5: memref<1x2x1x16xf32, #tpu.memory_space<vmem>>, %arg6: memref<1x32x32xf32, #tpu.memory_space<vmem>>, %arg7: memref<1x32xf32, #tpu.memory_space<vmem>>, %arg8: memref<8x32xf32, #tpu.memory_space<vmem>>, %arg9: memref<8x32xf32, #tpu.memory_space<vmem>>) attributes {dimension_semantics = [#tpu.dimension_semantics<parallel>, #tpu.dimension_semantics<arbitrary>], iteration_bounds = array<i64: 2, 2>, scalar_prefetch = 0 : i64, scratch_operands = 1 : i64, tpu.core_type = #tpu.core_type<tc>, window_params = [{transform_indices = @transform_0, window_bounds = array<i64: 1, 1, 8, 8>}, {transform_indices = @transform_1, window_bounds = array<i64: 1, 8, 32>}, {transform_indices = @transform_2, window_bounds = array<i64: 1, 2, 48, 16>}, {transform_indices = @transform_3, window_bounds = array<i64: 1, 2, 1, 16>}, {transform_indices = @transform_4, window_bounds = array<i64: 1, 32, 32>}, {pipeline_mode = #tpu.pipeline_mode<synchronous>, transform_indices = @transform_5, window_bounds = array<i64: 1, 32>}, {transform_indices = @transform_6, window_bounds = array<i64: 8, 32>}]} {
    %c0_i32 = arith.constant 0 : i32
    %0 = arith.cmpi eq, %arg1, %c0_i32 : i32
    %1 = arith.extui %0 : i1 to i32
    %c0_i32_0 = arith.constant 0 : i32
    %2 = arith.cmpi ne, %1, %c0_i32_0 : i32
    scf.if %2 {
      %cst_43 = arith.constant 0.000000e+00 : f32
      %65 = vector.broadcast %cst_43 : f32 to vector<8x32xf32>
      %c0_44 = arith.constant 0 : index
      %c0_45 = arith.constant 0 : index
      %66 = vector.load %arg9[%c0_44, %c0_45] : memref<8x32xf32, #tpu.memory_space<vmem>>, vector<8x32xf32>
      tpu.vector_store %arg9[%c0_44, %c0_45], %65 {strides = array<i32>} : memref<8x32xf32, #tpu.memory_space<vmem>>, vector<8x32xf32>,
    } else {
    }
    %c0 = arith.constant 0 : index
    %c0_1 = arith.constant 0 : index
    %c0_2 = arith.constant 0 : index
    %c0_3 = arith.constant 0 : index
    %3 = vector.load %arg2[%c0, %c0_1, %c0_2, %c0_3] : memref<1x1x8x8xf32, #tpu.memory_space<vmem>>, vector<1x1x8x8xf32>
    %4 = vector.shape_cast %3 : vector<1x1x8x8xf32> to vector<1x8x8xf32>
    %c0_4 = arith.constant 0 : index
    %c0_5 = arith.constant 0 : index
    %c0_6 = arith.constant 0 : index
    %5 = vector.load %arg3[%c0_4, %c0_5, %c0_6] : memref<1x8x32xf32, #tpu.memory_space<vmem>>, vector<1x8x32xf32>
    %6 = vector.shape_cast %5 : vector<1x8x32xf32> to vector<8x32xf32>
    %cst = arith.constant dense<0.000000e+00> : vector<1x8xf32>
    %7 = vector.multi_reduction <add>, %4, %cst [2] : vector<1x8x8xf32> to vector<1x8xf32>
    %8 = vector.shape_cast %7 : vector<1x8xf32> to vector<1x8x1xf32>
    %cst_7 = arith.constant 1.000000e+00 : f32
    %9 = vector.broadcast %cst_7 : f32 to vector<1x8x1xf32>
    %10 = arith.addf %8, %9 : vector<1x8x1xf32>
    %11 = vector.shape_cast %10 : vector<1x8x1xf32> to vector<8x1xf32>
    %c0_8 = arith.constant 0 : index
    %c0_9 = arith.constant 0 : index
    %c0_10 = arith.constant 0 : index
    %12 = vector.load %arg6[%c0_8, %c0_9, %c0_10] : memref<1x32x32xf32, #tpu.memory_space<vmem>>, vector<1x32x32xf32>
    %13 = vector.shape_cast %12 : vector<1x32x32xf32> to vector<32x32xf32>
    %cst_11 = arith.constant dense<0.000000e+00> : vector<8x32xf32>
    %14 = tpu.matmul %6, %13, %cst_11 {dimension_numbers = #tpu.dot_dimension_numbers<[1], [0], [0], [1], [0, 0, 1, 1], [], []>} : vector<8x32xf32>, vector<32x32xf32>, vector<8x32xf32> -> vector<8x32xf32>
    "tpu.trace_start"() <{level = 10 : i32, message = "bij,bjd->bid"}> : () -> ()
    %cst_12 = arith.constant dense<0.000000e+00> : vector<1x8x32xf32>
    %15 = tpu.matmul %4, %5, %cst_12 {dimension_numbers = #tpu.dot_dimension_numbers<[2], [1], [1], [2], [0, 0, 0, 1, 1, 2], [0], [0]>} : vector<1x8x8xf32>, vector<1x8x32xf32>, vector<1x8x32xf32> -> vector<1x8x32xf32>
    "tpu.trace_stop"() : () -> ()
    %16 = arith.addf %15, %5 : vector<1x8x32xf32>
    %17 = vector.shape_cast %16 : vector<1x8x32xf32> to vector<8x32xf32>
    %c0_13 = arith.constant 0 : index
    %c0_14 = arith.constant 0 : index
    %c0_15 = arith.constant 0 : index
    %c0_16 = arith.constant 0 : index
    %18 = vector.load %arg4[%c0_13, %c0_14, %c0_15, %c0_16] : memref<1x2x48x16xf32, #tpu.memory_space<vmem>>, vector<1x1x48x16xf32>
    %19 = vector.shape_cast %18 : vector<1x1x48x16xf32> to vector<48x16xf32>
    %c0_17 = arith.constant 0 : index
    %c0_18 = arith.constant 0 : index
    %c0_19 = arith.constant 0 : index
    %c0_20 = arith.constant 0 : index
    %20 = vector.load %arg5[%c0_17, %c0_18, %c0_19, %c0_20] : memref<1x2x1x16xf32, #tpu.memory_space<vmem>>, vector<1x1x1x16xf32>
    %21 = vector.shape_cast %20 : vector<1x1x1x16xf32> to vector<1x16xf32>
    %cst_21 = arith.constant 2.000000e+00 : f32
    %22 = vector.broadcast %cst_21 : f32 to vector<1x16xf32>
    %23 = arith.mulf %22, %21 : vector<1x16xf32>
    %24 = vector.extract_strided_slice %19 {offsets = [0, 0], sizes = [32, 16], strides = [1, 1]} : vector<48x16xf32> to vector<32x16xf32>
    %cst_22 = arith.constant dense<0.000000e+00> : vector<8x16xf32>
    %25 = tpu.matmul %17, %24, %cst_22 {dimension_numbers = #tpu.dot_dimension_numbers<[1], [0], [0], [1], [0, 0, 1, 1], [], []>} : vector<8x32xf32>, vector<32x16xf32>, vector<8x16xf32> -> vector<8x16xf32>
    %26 = vector.broadcast %23 : vector<1x16xf32> to vector<8x16xf32>
    %27 = arith.addf %26, %25 : vector<8x16xf32>
    %28 = vector.broadcast %11 : vector<8x1xf32> to vector<8x16xf32>
    %29 = arith.divf %27, %28 : vector<8x16xf32>
    %cst_23 = arith.constant 0.000000e+00 : f32
    %30 = vector.broadcast %cst_23 : f32 to vector<8x16xf32>
    %31 = arith.maximumf %29, %30 : vector<8x16xf32>
    %32 = vector.extract_strided_slice %13 {offsets = [0, 0], sizes = [16, 32], strides = [1, 1]} : vector<32x32xf32> to vector<16x32xf32>
    %cst_24 = arith.constant dense<0.000000e+00> : vector<8x32xf32>
    %33 = tpu.matmul %31, %32, %cst_24 {dimension_numbers = #tpu.dot_dimension_numbers<[1], [0], [0], [1], [0, 0, 1, 1], [], []>} : vector<8x16xf32>, vector<16x32xf32>, vector<8x32xf32> -> vector<8x32xf32>
    %34 = arith.addf %14, %33 : vector<8x32xf32>
    %35 = vector.shape_cast %31 : vector<8x16xf32> to vector<1x8x16xf32>
    "tpu.trace_start"() <{level = 10 : i32, message = "bij,bjd->bid"}> : () -> ()
    %cst_25 = arith.constant dense<0.000000e+00> : vector<1x8x16xf32>
    %36 = tpu.matmul %4, %35, %cst_25 {dimension_numbers = #tpu.dot_dimension_numbers<[2], [1], [1], [2], [0, 0, 0, 1, 1, 2], [0], [0]>} : vector<1x8x8xf32>, vector<1x8x16xf32>, vector<1x8x16xf32> -> vector<1x8x16xf32>
    "tpu.trace_stop"() : () -> ()
    %37 = arith.addf %36, %35 : vector<1x8x16xf32>
    %38 = vector.shape_cast %37 : vector<1x8x16xf32> to vector<8x16xf32>
    %c0_26 = arith.constant 0 : index
    %c1 = arith.constant 1 : index
    %c0_27 = arith.constant 0 : index
    %c0_28 = arith.constant 0 : index
    %39 = vector.load %arg4[%c0_26, %c1, %c0_27, %c0_28] : memref<1x2x48x16xf32, #tpu.memory_space<vmem>>, vector<1x1x48x16xf32>
    %40 = vector.shape_cast %39 : vector<1x1x48x16xf32> to vector<48x16xf32>
    %c0_29 = arith.constant 0 : index
    %c1_30 = arith.constant 1 : index
    %c0_31 = arith.constant 0 : index
    %c0_32 = arith.constant 0 : index
    %41 = vector.load %arg5[%c0_29, %c1_30, %c0_31, %c0_32] : memref<1x2x1x16xf32, #tpu.memory_space<vmem>>, vector<1x1x1x16xf32>
    %42 = vector.shape_cast %41 : vector<1x1x1x16xf32> to vector<1x16xf32>
    %cst_33 = arith.constant 2.000000e+00 : f32
    %43 = vector.broadcast %cst_33 : f32 to vector<1x16xf32>
    %44 = arith.mulf %43, %42 : vector<1x16xf32>
    %45 = vector.extract_strided_slice %40 {offsets = [0, 0], sizes = [32, 16], strides = [1, 1]} : vector<48x16xf32> to vector<32x16xf32>
    %cst_34 = arith.constant dense<0.000000e+00> : vector<8x16xf32>
    %46 = tpu.matmul %17, %45, %cst_34 {dimension_numbers = #tpu.dot_dimension_numbers<[1], [0], [0], [1], [0, 0, 1, 1], [], []>} : vector<8x32xf32>, vector<32x16xf32>, vector<8x16xf32> -> vector<8x16xf32>
    %47 = vector.broadcast %44 : vector<1x16xf32> to vector<8x16xf32>
    %48 = arith.addf %47, %46 : vector<8x16xf32>
    %49 = vector.extract_strided_slice %40 {offsets = [32, 0], sizes = [16, 16], strides = [1, 1]} : vector<48x16xf32> to vector<16x16xf32>
    %cst_35 = arith.constant dense<0.000000e+00> : vector<8x16xf32>
    %50 = tpu.matmul %38, %49, %cst_35 {dimension_numbers = #tpu.dot_dimension_numbers<[1], [0], [0], [1], [0, 0, 1, 1], [], []>} : vector<8x16xf32>, vector<16x16xf32>, vector<8x16xf32> -> vector<8x16xf32>
    %51 = arith.addf %48, %50 : vector<8x16xf32>
    %52 = vector.broadcast %11 : vector<8x1xf32> to vector<8x16xf32>
    %53 = arith.divf %51, %52 : vector<8x16xf32>
    %cst_36 = arith.constant 0.000000e+00 : f32
    %54 = vector.broadcast %cst_36 : f32 to vector<8x16xf32>
    %55 = arith.maximumf %53, %54 : vector<8x16xf32>
    %56 = vector.extract_strided_slice %13 {offsets = [16, 0], sizes = [16, 32], strides = [1, 1]} : vector<32x32xf32> to vector<16x32xf32>
    %cst_37 = arith.constant dense<0.000000e+00> : vector<8x32xf32>
    %57 = tpu.matmul %55, %56, %cst_37 {dimension_numbers = #tpu.dot_dimension_numbers<[1], [0], [0], [1], [0, 0, 1, 1], [], []>} : vector<8x16xf32>, vector<16x32xf32>, vector<8x32xf32> -> vector<8x32xf32>
    %58 = arith.addf %34, %57 : vector<8x32xf32>
    %c0_38 = arith.constant 0 : index
    %c0_39 = arith.constant 0 : index
    %59 = vector.load %arg9[%c0_38, %c0_39] : memref<8x32xf32, #tpu.memory_space<vmem>>, vector<8x32xf32>
    %60 = arith.addf %59, %58 : vector<8x32xf32>
    %c0_40 = arith.constant 0 : index
    %c0_41 = arith.constant 0 : index
    %61 = vector.load %arg9[%c0_40, %c0_41] : memref<8x32xf32, #tpu.memory_space<vmem>>, vector<8x32xf32>
    tpu.vector_store %arg9[%c0_40, %c0_41], %60 {strides = array<i32>} : memref<8x32xf32, #tpu.memory_space<vmem>>, vector<8x32xf32>,
    %c1_i32 = arith.constant 1 : i32
    %62 = arith.cmpi eq, %arg1, %c1_i32 : i32
    %63 = arith.extui %62 : i1 to i32
    %c0_i32_42 = arith.constant 0 : i32
    %64 = arith.cmpi ne, %63, %c0_i32_42 : i32
    scf.if %64 {
      %c0_43 = arith.constant 0 : index
      %c0_44 = arith.constant 0 : index
      %65 = vector.load %arg9[%c0_43, %c0_44] : memref<8x32xf32, #tpu.memory_space<vmem>>, vector<8x32xf32>
      %c0_45 = arith.constant 0 : index
      %c0_46 = arith.constant 0 : index
      %66 = vector.load %arg7[%c0_45, %c0_46] : memref<1x32xf32, #tpu.memory_space<vmem>>, vector<1x32xf32>
      %67 = vector.broadcast %66 : vector<1x32xf32> to vector<8x32xf32>
      %68 = arith.addf %65, %67 : vector<8x32xf32>
      %c0_47 = arith.constant 0 : index
      %c0_48 = arith.constant 0 : index
      %69 = vector.load %arg8[%c0_47, %c0_48] : memref<8x32xf32, #tpu.memory_space<vmem>>, vector<8x32xf32>
      tpu.vector_store %arg8[%c0_47, %c0_48], %68 {strides = array<i32>} : memref<8x32xf32, #tpu.memory_space<vmem>>, vector<8x32xf32>,
    } else {
    }
    return
  }
  func.func @transform_0(%arg0: i32, %arg1: i32) -> (i32, i32, i32, i32) {
    %c0_i32 = arith.constant 0 : i32
    %c0_i32_0 = arith.constant 0 : i32
    %c0_i32_1 = arith.constant 0 : i32
    return %arg1, %arg0, %c0_i32, %c0_i32_0 : i32, i32, i32, i32
  }
  func.func @transform_1(%arg0: i32, %arg1: i32) -> (i32, i32, i32) {
    %c0_i32 = arith.constant 0 : i32
    %c0_i32_0 = arith.constant 0 : i32
    %c0_i32_1 = arith.constant 0 : i32
    return %arg0, %c0_i32, %c0_i32_0 : i32, i32, i32
  }
  func.func @transform_2(%arg0: i32, %arg1: i32) -> (i32, i32, i32, i32) {
    %c0_i32 = arith.constant 0 : i32
    %c0_i32_0 = arith.constant 0 : i32
    %c0_i32_1 = arith.constant 0 : i32
    %c0_i32_2 = arith.constant 0 : i32
    return %arg1, %c0_i32, %c0_i32_0, %c0_i32_1 : i32, i32, i32, i32
  }
  func.func @transform_3(%arg0: i32, %arg1: i32) -> (i32, i32, i32, i32) {
    %c0_i32 = arith.constant 0 : i32
    %c0_i32_0 = arith.constant 0 : i32
    %c0_i32_1 = arith.constant 0 : i32
    %c0_i32_2 = arith.constant 0 : i32
    return %arg1, %c0_i32, %c0_i32_0, %c0_i32_1 : i32, i32, i32, i32
  }
  func.func @transform_4(%arg0: i32, %arg1: i32) -> (i32, i32, i32) {
    %c0_i32 = arith.constant 0 : i32
    %c0_i32_0 = arith.constant 0 : i32
    %c0_i32_1 = arith.constant 0 : i32
    return %arg1, %c0_i32, %c0_i32_0 : i32, i32, i32
  }
  func.func @transform_5(%arg0: i32, %arg1: i32) -> (i32, i32) {
    %c0_i32 = arith.constant 0 : i32
    %c0_i32_0 = arith.constant 0 : i32
    %c0_i32_1 = arith.constant 0 : i32
    return %c0_i32, %c0_i32_0 : i32, i32
  }
  func.func @transform_6(%arg0: i32, %arg1: i32) -> (i32, i32) {
    %c0_i32 = arith.constant 0 : i32
    %c0_i32_0 = arith.constant 0 : i32
    return %arg0, %c0_i32 : i32, i32
  }
}

</mosaic_0001>

<bundles_post_ra>
// kernel: tpu_custom_call.1
= control target key start
LH: loop header
LB: loop body
LE: loop exit
PB: predicated region body
PF: predicated region fallthrough
CT: control target
= control target key end

     0   :  { %s1734_s0 = inlined_call_operand.vmem [shape: f32[2,2,8,8], index: 0, kind: input, shape index: {}]   ;;  %s1735_s1 = inlined_call_operand.vmem [shape: f32[2,8,32], index: 1, kind: input, shape index: {}]   ;;  %s1736_s2 = inlined_call_operand.vmem [shape: f32[2,2,48,16], index: 2, kind: input, shape index: {}]   ;;  %s1737_s3 = inlined_call_operand.vmem [shape: f32[2,2,1,16], index: 3, kind: input, shape index: {}]   ;;  %s1738_s4 = inlined_call_operand.vmem [shape: f32[2,32,32], index: 4, kind: input, shape index: {}]   ;;  %s1739_s5 = inlined_call_operand.vmem [shape: f32[1,32], index: 5, kind: input, shape index: {}]   ;;  %s1740_s6 = inlined_call_operand.hbm [shape: f32[16,32], index: 6, kind: output, shape index: {}]  }
   0x1   :  { %1751 = sst [smem:[#allocation15_spill]] %s1740_s6 }
   0x2   :  { %11 = vsyncpa [#allocation4], 0 }
   0x3   :  { %13 = vsyncpa [#allocation4 + $0x1], 0  ;;  %s1508_s21 = smov 0   ;;  %s1510_s22 = smov 0  }
   0x4   :  { %s1512_s23 = smov 0   ;;  %s1514_s24 = smov 0  }
   0x5   :  { %s1516_s25 = smov 0   ;;  %s1518_s26 = smov 0  }
   0x6   :  { %s1520_s27 = smov 0   ;;  %s1522_s28 = smov 0  }
   0x7 LB: > { %1752 = sst [smem:[#allocation6_spill]] %s1438_s21  ;;  %s1136_s29 = sadd.s32 4294967295, %s1466_s28   ;;  %s1466_s28 = sphi %s1522_s28, %s19_s28   ;;  %s1462_s27 = sphi %s1520_s27, %s1774_s27   ;;  %s1458_s26 = sphi %s1518_s26, %s1777_s26   ;;  %s1454_s25 = sphi %s1516_s25, %s1772_s25   ;;  %s1450_s24 = sphi %s1514_s24, %s1771_s24   ;;  %s1446_s23 = sphi %s1512_s23, %s1770_s23   ;;  %s1442_s22 = sphi %s1510_s22, %s1776_s22   ;;  %s1438_s21 = sphi %s1508_s21, %s1775_s21  }
   0x8   : > { %1753 = sst [smem:[#allocation7_spill]] %s1446_s23  ;;  %s1137_s30 = sadd.s32 4294967294, %s1466_s28  }
   0x9   : > { %1754 = sst [smem:[#allocation8_spill]] %s1458_s26  ;;  %s28_s7 = sadd.s32 1, %s1458_s26 }
   0xa   : > { %1755 = sst [smem:[#allocation9_spill]] %s1462_s27  ;;  %p29_p0 = scmp.ge.s32.totalorder %s28_s7, 2 }
   0xb   : > { %1756 = sst [smem:[#allocation10_spill]] %s1466_s28  ;;  %s31_s8 = sadd.s32 1, %s1462_s27 }
   0xc   : > { %p201_p1 = scmp.ne.s32.totalorder %s1446_s23, %s1442_s22  ;;  %p202_p2 = scmp.eq.s32.totalorder %s1136_s29, 3 }
   0xd   : > { %s1779_s7 = smov (%p29_p0, %s28_s7), 0  ;;  %s1781_s8 = smov (!%p29_p0, %s31_s8), %s1462_s27 }
   0xe   : > { %1757 = sst [smem:[#allocation11_spill]] %s1779_s7  ;;  %p1557_p3 = por %p202_p2, %p201_p1 }
   0xf   : > { %p207_p4 = scmp.ne.s32.totalorder %s1442_s22, %s1438_s21  ;;  %p33_p5 = scmp.ge.s32.totalorder %s1781_s8, 2 }
  0x10   : > { %p208_p6 = scmp.eq.s32.totalorder %s1137_s30, 3  ;;  %p1140_p7 = scmp.ge.s32.totalorder %s1466_s28, 1 }
  0x11   : > { %p270_p8 = scmp.lt.s32.totalorder %s1466_s28, 5  ;;  %s1783_s8 = smov (%p33_p5, %s1781_s8), 0 }
  0x12   : > { %1759 = sst [smem:[#allocation12_spill]] %s1783_s8  ;;  %p1567_p9 = por %p208_p6, %p207_p4 }
  0x13   : > { %p271_p10 = pnand %p1140_p7, %p270_p8  ;;  %s188_s11 = ssub.s32 %s1462_s27, %s1783_s8 }
  0x14   : > { %s1760_s10 = scalar_select %p1567_p9, 1, 0 }
  0x15   : > { %s191_s12 = sadd.s32 1, %s1446_s23  ;;  %p189_p11 = scmp.eq.s32.totalorder %s188_s11, 0 }
  0x16   : > { %1761 = sst [smem:[#allocation13_spill]] %s1760_s10  ;;  %274 = sbr.rel (%p271_p10) target bundleno = 1177 (0x499), region = 44 }
  0x17   : > { %s1575_s13 = scalar_select %p189_p11, %s1446_s23, %s191_s12  }
  0x18   : > { %s1744_s14 = sand.u32 (!%p271_p10), 1, %s1442_s22   ;;  %p321_p12 = scmp.lt.s32.totalorder (!%p271_p10), %s1450_s24, 1 }
  0x19   : > { %1762 = sst [smem:[#allocation14_spill]] %s1575_s13  ;;  %s1581_s15 = sshll.u32 (!%p271_p10), %s1744_s14, 3 }
  0x1a   : > { %p323_p13 = scmp.lt.s32.totalorder (!%p271_p10), %s1454_s25, 1  ;;  %p1149_p0 = scmp.ne.s32.totalorder (!%p271_p10), %s1450_s24, 0 }
  0x1d   : > { %s322_s16 = scalar_select %p321_p12, %s1450_s24, 1 }
  0x1e   : > { %s324_s17 = scalar_select %p323_p13, %s1454_s25, 1 }
  0x1f   : > { %s1142_s18 = sshll.u32 %s322_s16, 1  ;;  %s1294_s19 = smul.u32 96, %s322_s16  ;;  %vm351_vm0 = vcmask (!%p1149_p0), 261120   ;;  %v1468_v0 = vmov (!%p1149_p0), 0.0  }
  0x20   : > { %s326_s20 = sadd.s32 %s1142_s18, %s324_s17  ;;  %s1144_s29 = sshll.u32 %s324_s17, 3  ;;  %352 = vst.msk [vmem:[#allocation2] sm:$0xff] (!%p1149_p0), %vm351_vm0, %v1468_v0 }
  0x21   : > { %s1143_s30 = sshll.u32 %s326_s20, 3  ;;  %s332_s8 = scalar_lea.vmem %s1735_s1, %s1144_s29 }
  0x22   : > { %s328_s26 = scalar_lea.vmem %s1734_s0, %s1143_s30  ;;  %s1595_s23 = scalar_lea.vmem %s1736_s2, %s1294_s19 }
  0x23   : > { %s1600_s28 = scalar_lea.vmem %s1737_s3, %s1142_s18  ;;  %s1171_s17 = sshll.u32 %s322_s16, 5 }
  0x24   : > { %s1605_s11 = scalar_lea.vmem %s1738_s4, %s1171_s17  ;;  %s320_s29 = scalar_lea.vmem [#allocation3], %s1581_s15 }
  0x25   : > { %350 = sbr.rel (%p1149_p0) target bundleno = 44 (0x2c), region = 48 }
  0x2c PF: > { %v1609_v1 = vld [vmem:[%s332_s8] sm:$0xff]  ;;  %vm355_vm1 = vcmask 64512   ;;  %v1469_v3 = vmov 0.0   ;;  %vm1470_vm2 = vmmov 0   ;;  %v438_v5 = vld [vmem:[%s1595_s23 + $0x8] sm:$0xff]  ;;  %v439_v6 = vld [vmem:[%s1595_s23 + $0x10] sm:$0xff]  ;;  %v518_v25 = vlaneseq }
  0x2d   : > { %v1611_v2 = vld [vmem:[%s328_s26] sm:$0xff]  ;;  %1200 = vmatprep.subr.mxu0 %v1469_v3  ;;  %1202 = vmatprep.mubr.msk.f32.mxu0 %vm1470_vm2, %v1469_v3  ;;  %v1471_v7 = vmov 0.0|0.0   ;;  %v440_v9 = vld [vmem:[%s1595_s23 + $0x18] sm:$0xff]  ;;  %v1155_v12 = vld [vmem:[%s1595_s23 + $0x30] sm:$0xff]  ;;  %vm443_vm3 = vcmask 261120   ;;  %vm527_vm4 = vcmask 130048  }
  0x2e   : > { %v437_v4 = vld [vmem:[%s1595_s23] sm:$0xff]  ;;  %1201 = vmatpush3.msra.mxu0 %v1609_v1  ;;  %1264 = vmatprep.subr.bf16.mxu1 %v1471_v7  ;;  %v1268_v10 = vpack.c.bf16 %v440_v9, %v439_v6  ;;  %v356_v11 = vsel %vm355_vm1, %v1611_v2, 0.0  ;;  %v1156_v13 = vld [vmem:[%s1595_s23 + $0x38] sm:$0xff]  ;;  %v1158_v19 = vld [vmem:[%s1595_s23 + $0x48] sm:$0xff]  ;;  %v519_v27 = vshrl.u32 %v518_v25, 7  ;;  %p1165_p1 = scmp.ne.s32.totalorder %s1450_s24, 1 }
  0x2f   : > { %v1265_v8 = vpack.c.bf16 %v438_v5, %v437_v4  ;;  %1203 = vmatmul.mubr.msk.f32.vlgmr.msra.gmra.mrb[0].mxu0 %vm355_vm1, %v1611_v2  ;;  %1213 = vmatprep.mubr.msk.f32.mxu1 %vm1470_vm2, %v1469_v3  ;;  %v1280_v15 = vpack.c.bf16 %v1156_v13, %v1155_v12  ;;  %v1157_v18 = vld [vmem:[%s1595_s23 + $0x40] sm:$0xff]  ;;  %v361_v22 = vld [vmem:[%s1605_s11 + $0x8] sm:$0xff]  ;;  %v362_v38 = vld [vmem:[%s1605_s11 + $0x10] sm:$0xff] }
  0x30   : > { %1270 = vmatprep.subr.bf16.mxu0 %v1471_v7  ;;  %1220 = vmatprep.mubr.msk.f32.mxu0 %vm1470_vm2, %v1469_v3  ;;  %v1283_v20 = vpack.c.bf16 %v1158_v19, %v1157_v18  ;;  %v360_v21 = vld [vmem:[%s1605_s11] sm:$0xff]  ;;  %v520_v30 = vsub.s32 0, %v519_v27  ;;  %v363_v39 = vld [vmem:[%s1605_s11 + $0x18] sm:$0xff]  ;;  %v1159_v41 = vld [vmem:[%s1595_s23 + $0x50] sm:$0xff] }
  0x31   : > { %1266 = vmatpush3.bf16.msra.mxu1 %v1265_v8  ;;  %357 = vadd.xlane.f32.xlu0 %v356_v11  ;;  %v1271_v23 = vpack.c.bf16 %v361_v22, %v360_v21  ;;  %v441_v28 = vld [vmem:[%s1600_s28] sm:$0x1]  ;;  %v1277_v40 = vpack.c.bf16 %v363_v39, %v362_v38  ;;  %v1160_v42 = vld [vmem:[%s1595_s23 + $0x58] sm:$0xff]  ;;  %v1161_v52 = vld [vmem:[%s1600_s28 + $0x1] sm:$0x1] }
  0x32   : > { %1267 = vmatprep.subr.bf16.mxu1 %v1471_v7  ;;  %v442_v29 = vmul.f32 2.0, %v441_v28  ;;  %v1286_v43 = vpack.c.bf16 %v1160_v42, %v1159_v41  ;;  %v753_v53 = vmul.f32 2.0, %v1161_v52  ;;  %v981_v61 = vld [vmem:[#allocation2] sm:$0xff] }
  0x33   : > { %1272 = vmatpush3.bf16.msra.mxu0 %v1271_v23 }
  0x34   : > { %1273 = vmatprep.subr.bf16.mxu0 %v1471_v7  ;;  %v521_v31 = vrot.slane %v442_v29, %v520_v30  ;;  %v828_v54 = vrot.slane %v753_v53, %v520_v30 }
  0x35   : > { %1269 = vmatpush3.bf16.msra.mxu1 %v1268_v10 }
  0x36   : > { %1279 = vmatprep.subr.bf16.mxu1 %v1471_v7 }
  0xbe   : > { %v358_v24 = vpop.xlane.xlu0 %357 }
  0xbf   : > { %v359_v26 = vadd.f32 1.0, %v358_v24 }
  0xc1   : > { %1370 = vrcp.f32 %v359_v26 }
  0xcb   : > { %v1371_v32 = vpop.eup %1370 }
 0x102   : > { %v433_v14 = vpop.f32.mrb[0].mxu0 }
 0x103   : > { %v434_v16 = vadd.f32 %v433_v14, %v1609_v1  ;;  %v1204_v17 = vpop.f32.mrb[1].mxu0 }
 0x105   : > { %1214 = vmatmul.mubr.msk.f32.vlgmr.msra.gmra.mrb[0].mxu1 %vm443_vm3, %v434_v16 }
 0x106   : > { %1281 = vmatpush3.bf16.msra.mxu1 %v1280_v15  ;;  %1247 = vmatprep.mubr.msk.f32.mxu1 %vm1470_vm2, %v1469_v3 }
 0x107   : > { %1282 = vmatprep.subr.bf16.mxu1 %v1471_v7 }
 0x10a   : > { %1284 = vmatpush3.bf16.msra.mxu1 %v1283_v20 }
 0x10b   : > { %1285 = vmatprep.subr.bf16.mxu1 %v1471_v7 }
 0x10d   : > { %1248 = vmatmul.mubr.msk.f32.vlgmr.msra.gmra.mrb[2].mxu1 %vm443_vm3, %v434_v16 }
 0x10e   : > { %1254 = vmatprep.mubr.msk.f32.mxu1 %vm1470_vm2, %v1469_v3  ;;  %1287 = vmatpush3.bf16.msra.mxu1 %v1286_v43 }
 0x1d8   : > { %v513_v33 = vpop.f32.mrb[0].mxu1 }
 0x1d9   : > { %v523_v34 = vadd.f32 %v521_v31, %v513_v33  ;;  %v1215_v35 = vpop.f32.mrb[1].mxu1 }
 0x1db   : > { %v525_v36 = vmul.f32 %v1371_v32, %v523_v34 }
 0x1dd   : > { %v526_v37 = vmax.f32 %v525_v36, 0.0 }
 0x1df   : > { %1221 = vmatmul.mubr.msk.f32.vlgmr.msra.gmra.mrb[2].mxu0 %vm527_vm4, %v526_v37 }
 0x1e0   : > { %1275 = vmatpush3.bf16.msra.mxu0 %v1271_v23  ;;  %1231 = vmatprep.mubr.msk.f32.mxu0 %vm1470_vm2, %v1469_v3 }
 0x1e1   : > { %1276 = vmatprep.subr.bf16.mxu0 %v1471_v7 }
 0x1e4   : > { %1278 = vmatpush3.bf16.msra.mxu0 %v1277_v40 }
 0x1e5   : > { %1234 = vmatprep.subr.mxu0 %v1469_v3 }
 0x1e7   : > { %1232 = vmatmul.mubr.msk.f32.vlgmr.msra.gmra.mrb[4].mxu0 %vm443_vm3, %v1609_v1 }
 0x1e8   : > { %1235 = vmatpush3.msra.mxu0 %v526_v37  ;;  %1236 = vmatprep.mubr.msk.f32.mxu0 %vm1470_vm2, %v1469_v3 }
 0x1e9   : > { %1288 = vmatprep.subr.bf16.mxu0 %v1471_v7 }
 0x1eb   : > { %1237 = vmatmul.mubr.msk.f32.vlgmr.msra.gmra.mrb[6].mxu0 %vm355_vm1, %v1611_v2  ;;  %v1166_v2 = vld [vmem:[%s1739_s5] ss:$0 sm:$0xff] (!%p1165_p1) }
 0x1ec   : > { %1290 = vmatpush3.bf16.msra.mxu0 %v1277_v40  ;;  %1261 = vmatprep.mubr.msk.f32.mxu0 %vm1470_vm2, %v1469_v3 }
 0x2b2   : > { %v597_v44 = vpop.f32.mrb[2].mxu0 }
 0x2b3   : > { %v1222_v45 = vpop.f32.mrb[3].mxu0 }
 0x2ba   : > { %v670_v46 = vpop.f32.mrb[4].mxu0 }
 0x2bb   : > { %v671_v47 = vadd.f32 %v670_v46, %v597_v44  ;;  %v1233_v48 = vpop.f32.mrb[5].mxu0 }
 0x2be   : > { %v740_v49 = vpop.f32.mrb[6].mxu0 }
 0x2bf   : > { %v741_v50 = vadd.f32 %v740_v49, %v526_v37  ;;  %v1238_v51 = vpop.f32.mrb[7].mxu0 }
 0x2c1   : > { %1255 = vmatmul.mubr.msk.f32.vlgmr.msra.gmra.mrb[2].mxu1 %vm527_vm4, %v741_v50 }
 0x394   : > { %v900_v55 = vpop.f32.mrb[2].mxu1 }
 0x395   : > { %v1291_v56 = vadd.f32 %v900_v55, %v828_v54  ;;  %v1256_v57 = vpop.f32.mrb[3].mxu1 }
 0x397   : > { %v905_v58 = vmul.f32 %v1371_v32, %v1291_v56 }
 0x399   : > { %v906_v59 = vmax.f32 %v905_v58, 0.0 }
 0x39b   : > { %1262 = vmatmul.mubr.msk.f32.vlgmr.msra.gmra.mrb[8].mxu0 %vm527_vm4, %v906_v59 }
 0x46d   : > { %987 = sbr.rel (%p1165_p1) target bundleno = 1150 (0x47e), region = 52 }
 0x46e   : > { %v976_v60 = vpop.f32.mrb[8].mxu0 }
 0x46f   : > { %v980_v62 = vadd.f32 %v976_v60, %v671_v47  ;;  %v1263_v63 = vpop.f32.mrb[9].mxu0 }
 0x471   : > { %v982_v0 = vadd.f32 %v981_v61, %v980_v62 }
 0x473   : > { %983 = vst.msk [vmem:[#allocation2] sm:$0xff] %vm443_vm3, %v982_v0 }
 0x47a   : > { %v988_v1 = vld [vmem:[#allocation2] sm:$0xff] }
 0x47b   : > { %v996_v3 = vadd.f32 %v1166_v2, %v988_v1 }
 0x47d   : > { %997 = vst.msk [vmem:[%s320_s29] sm:$0xff] %vm443_vm3, %v996_v3 }
 0x47e PF: > { %s1168_s23 = sshll.u32 %s1454_s25, 7  ;;  %s1763_s24 = sld [smem:[#allocation15_spill]] }
 0x47f   : > { %s1012_s8 = sshll.u32 %s320_s29, 4  ;;  %s1765_s10 = sand.u32 1, %s1442_s22   ;;  %s1013_s8 = int_to_ptr.vmem [resolvable:$true] %s1012_s8 }
 0x480   : > { %s999_s13 = scalar_lea.sflag [#allocation4], %s1765_s10  ;;  %s1372_s14 = scalar_lea.vmem %s1013_s8, 128 }
 0x481   : > { %p1373_p2 = scmp.ne.s32.totalorder %s1013_s8, %s1372_s14  ;;  %s1472_s16 = smov [#allocation3]  }
 0x482   : > { %s1376_s18 = sshll.u32 %s1472_s16, 4  ;;  %s1377_s18 = int_to_ptr.vmem [resolvable:$false] %s1376_s18 }
 0x483   : > { %p1374_p4 = pnand %p1373_p2, %p1557_p3  ;;  %s1378_s19 = scalar_lea.vmem %s1377_s18, 256 }
 0x484   : > { %s1764_s7 = smov %s1763_s24  ;;  %s1683_s28 = scalar_lea.hbm %s1763_s24, %s1168_s23 }
 0x485   : > { %p1375_p5 = pneg %p1374_p4  ;;  %p1379_p6 = scmp.lt.s32.totalorder %s1013_s8, %s1377_s18 }
 0x486   : > { %p1380_p7 = scmp.lt.s32.totalorder %s1378_s19, %s1372_s14 }
 0x488   : > { %p1381_p8 = por %p1380_p7, %p1379_p6 }
 0x48a   : > { %p1382_p10 = pnand %p1381_p8, %p1375_p5 }
 0x48c   : > { %1385 = shalt.err (!%p1382_p10)
}
 0x48d   : > { %s1386_s25 = scalar_lea.hbm %s1683_s28, 128  ;;  %s1390_s12 = scalar_lea.hbm %s1764_s7, 256 }
 0x48e   : > { %p1387_p11 = scmp.ne.s32.totalorder %s1683_s28, %s1386_s25  ;;  %p1391_p0 = scmp.lt.u32.totalorder %s1683_s28, %s1764_s7 }
 0x48f   : > { %p1392_p1 = scmp.lt.u32.totalorder %s1390_s12, %s1386_s25  ;;  %p1394_p4 = scmp.lt.u32.totalorder %s1386_s25, %s1683_s28 }
 0x490   : > { %p1388_p12 = pnand %p1387_p11, %p1557_p3 }
 0x491   : > { %p1393_p2 = por %p1392_p1, %p1391_p0 }
 0x492   : > { %p1389_p13 = pneg %p1388_p12 }
 0x493   : > { %p1395_p5 = por %p1394_p4, %p1393_p2 }
 0x495   : > { %p1396_p6 = pnand %p1395_p5, %p1389_p13 }
 0x497   : > { %1399 = shalt.err (!%p1396_p6)
}
 0x498   : > { %1295 = dma.vmem_to_hbm [thread:$0]  (%p1557_p3), %s1013_s8, 128, %s1683_s28, %s999_s13  }
 0x499 PF: > { %s1766_s11 = sld [smem:[#allocation10_spill]]  ;;  %s1767_s29 = sld [smem:[#allocation6_spill]] }
 0x49f   : > { %p1301_p7 = scmp.ge.s32.totalorder %s1766_s11, 2  ;;  %s1024_s21 = sand.u32 1, %s1767_s29  }
 0x4a0   : > { %s1025_s23 = scalar_lea.sflag [#allocation4], %s1024_s21 }
 0x4a1   : > { %p1298_p8 = pnand %p1301_p7, %p1567_p9 }
 0x4a3   : > { %1433 = dma.done.wait (!%p1298_p8), %s1025_s23, 128  }
 0x4a4   : > { %1435 = vsyncadd (!%p1298_p8), %s1025_s23, 4294967168  ;;  %s19_s28 = sadd.s32 1, %s1766_s11   ;;  %s1769_s26 = sld [smem:[#allocation7_spill]] }
 0x4a5   : > { %p16_p10 = scmp.ge.s32.totalorder %s19_s28, 6   ;;  %s1770_s23 = sld [smem:[#allocation14_spill]] }
 0x4a6   : > { %s1771_s24 = sld [smem:[#allocation8_spill]]  ;;  %s1772_s25 = sld [smem:[#allocation9_spill]] }
 0x4a7   : > { %s1773_s9 = sld [smem:[#allocation11_spill]]  ;;  %s1774_s27 = sld [smem:[#allocation12_spill]] }
 0x4a8   : > { %s1775_s21 = smov %s1442_s22  ;;  %18 = sbr.rel (!%p16_p10) target bundleno = 7 (0x7), region = 101 }
 0x4aa   : > { %s1776_s22 = smov %s1769_s26 }
 0x4ad   : > { %s1777_s26 = smov %s1773_s9 }
 0x4af   :  { %1030 = vsyncpa [#allocation4], 1 }
 0x4b0   :  { %1032 = vsyncpa [#allocation4 + $0x1], 1 }

</bundles_post_ra>
